<compile_context>
chip_gen: v7x
topology: tpu7x:2x2x1
jax: 0.10.0
libtpu: 0.0.40
codegen_flags: <defaults>
</compile_context>

<pallas_src>
import functools

import jax
import jax.numpy as jnp
from jax.experimental import pallas as pl
from jax.experimental.pallas import tpu as pltpu


def _entropy_map_kernel(x_ref, emap_ref, *, eps, c, k):
    # x_ref: (c*k, tn) tile (batch dim squeezed). Upcast in vregs.
    x = x_ref[...].astype(jnp.float32)
    e = x * jnp.log(x + eps)                       # log -> EUP, mul -> VPU
    # Channel reduction: rows [ci*k, (ci+1)*k) hold channel ci's k spatial chunks.
    acc = e[0:k, :]
    for ci in range(1, c):
        acc = acc + e[ci * k:(ci + 1) * k, :]
    # No tail mask needed: Pallas discards OOB lanes of the boundary out block.
    emap_ref[...] = -acc                           # (k, tn) per-position entropy


def _entropy_sum_kernel(x_ref, psum_ref, *, eps, n_valid_cols, needs_mask):
    # x_ref: (c*k, tn) tile. Fused sum: one partial scalar per grid step.
    x = x_ref[...].astype(jnp.float32)
    e = x * jnp.log(x + eps)
    row = jnp.sum(e, axis=0, keepdims=True)        # (1, tn) sublane reduce
    if needs_mask:
        # Mask AFTER the channel reduce (C x less VPU work); must be before the
        # lane sum so OOB garbage (possibly NaN) never reaches the scalar.
        j = pl.program_id(1)
        tn = row.shape[-1]
        lane = jax.lax.broadcasted_iota(jnp.int32, (1, tn), 1) + j * tn
        row = jnp.where(lane < n_valid_cols, row, 0.0)
    s = -jnp.sum(row)                              # scalar partial entropy sum
    psum_ref[...] = jnp.zeros(psum_ref.shape, jnp.float32) + s


def entropy(x, reduction="mean", eps=1e-16, tile_n=None):
    assert reduction in ("mean", "sum", "none")
    assert x.ndim >= 2
    b, c = x.shape[0], x.shape[1]
    spatial = tuple(x.shape[2:])
    hw = 1
    for s in spatial:
        hw *= s

    itemsize = jnp.dtype(x.dtype).itemsize

    # --- sublane fold: (B, C, HW) -> (B, C*k, HW/k), contiguous view only ---
    pack = 8 * max(1, 4 // itemsize)               # sublanes per vreg for dtype
    k = 1
    if c < pack and hw > 1:
        for cand in range(pack // c, 1, -1):
            if hw % cand == 0 and (hw // cand) >= 128:
                k = cand
                break
    c_fold = c * k
    hw_cols = hw // k
    x3 = x.reshape(b, c_fold, hw_cols)             # pure reshape, no transpose

    # --- generation-aware VMEM budget / tile size ---
    try:
        info = pltpu.get_tpu_info()
        vmem_bytes = int(getattr(info, "vmem_capacity_bytes", 64 * 1024 * 1024))
    except Exception:
        vmem_bytes = 64 * 1024 * 1024
    vmem_bytes = max(vmem_bytes, 32 * 1024 * 1024)
    in_budget = vmem_bytes // 6                    # bytes for 2 dbl-buffered in tiles
    vmem_limit = int(min(vmem_bytes * 3 // 4, 112 * 1024 * 1024))

    if tile_n is None:
        tn = in_budget // (2 * c_fold * 4)         # size with f32 (conservative)
    else:
        tn = int(tile_n)
    tn = max(128, (tn // 128) * 128)               # multiple of 128 lanes
    if tn >= hw_cols:
        tn = hw_cols                               # single full-extent tile
    grid_j = pl.cdiv(hw_cols, tn)

    # Keep >= 4 total grid steps when possible so v7x can shard across both TCs.
    if tile_n is None and b * grid_j < 4 and hw_cols > 128:
        desired_j = min(pl.cdiv(4, b), pl.cdiv(hw_cols, 128))
        if desired_j > grid_j:
            tn = ((pl.cdiv(hw_cols, desired_j) + 127) // 128) * 128
            tn = min(tn, hw_cols)
            grid_j = pl.cdiv(hw_cols, tn)

    needs_mask = (grid_j * tn != hw_cols)

    n_total = b * hw
    out_bytes = n_total * 4 if reduction == "none" else b * grid_j * 8 * 128 * 4
    cost = pl.CostEstimate(
        flops=3 * c * n_total,
        transcendentals=c * n_total,
        bytes_accessed=c * n_total * itemsize + out_bytes,
    )
    cparams = pltpu.CompilerParams(
        dimension_semantics=("parallel", "parallel"),
        vmem_limit_bytes=vmem_limit,
    )
    in_spec = pl.BlockSpec((None, c_fold, tn), lambda bi, j: (bi, 0, j))

    if reduction == "none":
        kernel = functools.partial(_entropy_map_kernel, eps=eps, c=c, k=k)
        emap = pl.pallas_call(
            kernel,
            out_shape=jax.ShapeDtypeStruct((b, k, hw_cols), jnp.float32),
            grid_spec=pltpu.PrefetchScalarGridSpec(
                num_scalar_prefetch=0,
                grid=(b, grid_j),
                in_specs=[in_spec],
                out_specs=pl.BlockSpec((None, k, tn), lambda bi, j: (bi, 0, j)),
            ),
            compiler_params=cparams,
            cost_estimate=cost,
        )(x3)
        return emap.reshape((b,) + spatial)

    # Fused sum / mean: one partial sum per grid step, broadcast over an aligned
    # (8, 128) tile; the wrapper reduces the tiny (b, grid_j) set of scalars.
    kernel = functools.partial(
        _entropy_sum_kernel, eps=eps, n_valid_cols=hw_cols, needs_mask=needs_mask)
    partials = pl.pallas_call(
        kernel,
        out_shape=jax.ShapeDtypeStruct((b, grid_j, 8, 128), jnp.float32),
        grid_spec=pltpu.PrefetchScalarGridSpec(
            num_scalar_prefetch=0,
            grid=(b, grid_j),
            in_specs=[in_spec],
            out_specs=pl.BlockSpec((None, None, 8, 128), lambda bi, j: (bi, j, 0, 0)),
        ),
        compiler_params=cparams,
        cost_estimate=cost,
    )(x3)
    total = jnp.sum(partials[:, :, 0, 0])
    if reduction == "sum":
        return total
    return total / n_total


def _entropy_ref(x, reduction="mean", eps=1e-16):
    xf = x.astype(jnp.float32)
    e = -jnp.sum(xf * jnp.log(xf + eps), axis=1)
    if reduction == "mean":
        return jnp.mean(e)
    if reduction == "sum":
        return jnp.sum(e)
    return e


if __name__ == "__main__":
    key = jax.random.PRNGKey(0)
    ok = True

    # NCHW input; softmax over channels so log sees positive values.
    logits = jax.random.normal(key, (2, 4, 16, 16), dtype=jnp.float32)
    x = jax.nn.softmax(logits, axis=1)
    for red in ("mean", "sum", "none"):
        out = jax.block_until_ready(entropy(x, reduction=red))
        ref = _entropy_ref(x, reduction=red)
        if not jnp.allclose(out, ref, rtol=1e-5, atol=1e-5):
            ok = False
            print(f"MISMATCH for reduction={red}")

    # Ragged-lane case: exercises the tail-tile mask / multi-step grid path
    # (c=3 -> sublane fold k=2 -> hw_cols=150, tile 128).
    logits2 = jax.random.normal(jax.random.PRNGKey(1), (2, 3, 300), dtype=jnp.float32)
    x2 = jax.nn.softmax(logits2, axis=1)
    for red in ("mean", "sum", "none"):
        out = jax.block_until_ready(entropy(x2, reduction=red, tile_n=128))
        ref = _entropy_ref(x2, reduction=red)
        if not jnp.allclose(out, ref, rtol=1e-5, atol=1e-5):
            ok = False
            print(f"MISMATCH (ragged) for reduction={red}")

    if ok:
        print("KERNEL_OK")
</pallas_src>

<mosaic_0001>
module attributes {stable_mosaic.version = 11 : i64} {
  func.func @_entropy_sum_kernel(%arg0: i32, %arg1: i32, %arg2: memref<1x8x128xf32, #tpu.memory_space<vmem>>, %arg3: memref<1x1x8x128xf32, #tpu.memory_space<vmem>>) attributes {dimension_semantics = [#tpu.dimension_semantics<parallel>, #tpu.dimension_semantics<parallel>], iteration_bounds = array<i64: 2, 1>, scalar_prefetch = 0 : i64, scratch_operands = 0 : i64, tpu.core_type = #tpu.core_type<tc>, window_params = [{transform_indices = @transform_0, window_bounds = array<i64: 1, 8, 128>}, {transform_indices = @transform_1, window_bounds = array<i64: 1, 1, 8, 128>}]} {
    %c0 = arith.constant 0 : index
    %c0_0 = arith.constant 0 : index
    %c0_1 = arith.constant 0 : index
    %0 = vector.load %arg2[%c0, %c0_0, %c0_1] : memref<1x8x128xf32, #tpu.memory_space<vmem>>, vector<1x8x128xf32>
    %1 = vector.shape_cast %0 : vector<1x8x128xf32> to vector<8x128xf32>
    %cst = arith.constant 1.000000e-16 : f32
    %2 = vector.broadcast %cst : f32 to vector<8x128xf32>
    %3 = arith.addf %1, %2 : vector<8x128xf32>
    %4 = math.log %3 : vector<8x128xf32>
    %5 = arith.mulf %1, %4 : vector<8x128xf32>
    %cst_2 = arith.constant dense<0.000000e+00> : vector<128xf32>
    %6 = vector.multi_reduction <add>, %5, %cst_2 [0] : vector<8x128xf32> to vector<128xf32>
    %7 = vector.shape_cast %6 : vector<128xf32> to vector<1x128xf32>
    %8 = vector.shape_cast %7 : vector<1x128xf32> to vector<1x1x128xf32>
    %cst_3 = arith.constant dense<0.000000e+00> : vector<1xf32>
    %9 = vector.multi_reduction <add>, %8, %cst_3 [1, 2] : vector<1x1x128xf32> to vector<1xf32>
    %10 = vector.shape_cast %9 : vector<1xf32> to vector<1x1x1xf32>
    %11 = vector.extract %10[0, 0, 0] : f32 from vector<1x1x1xf32>
    %cst_4 = arith.constant 0.000000e+00 : f32
    %12 = arith.subf %cst_4, %11 : f32
    %cst_5 = arith.constant 0.000000e+00 : f32
    %13 = vector.broadcast %cst_5 : f32 to vector<8x128xf32>
    %14 = vector.broadcast %12 : f32 to vector<8x128xf32>
    %15 = arith.addf %13, %14 : vector<8x128xf32>
    %c0_6 = arith.constant 0 : index
    %c0_7 = arith.constant 0 : index
    %c0_8 = arith.constant 0 : index
    %c0_9 = arith.constant 0 : index
    %16 = vector.load %arg3[%c0_6, %c0_7, %c0_8, %c0_9] : memref<1x1x8x128xf32, #tpu.memory_space<vmem>>, vector<1x1x8x128xf32>
    %17 = vector.shape_cast %16 : vector<1x1x8x128xf32> to vector<8x128xf32>
    %18 = vector.shape_cast %15 : vector<8x128xf32> to vector<1x1x8x128xf32>
    tpu.vector_store %arg3[%c0_6, %c0_7, %c0_8, %c0_9], %18 {strides = array<i32>} : memref<1x1x8x128xf32, #tpu.memory_space<vmem>>, vector<1x1x8x128xf32>,
    return
  }
  func.func @transform_0(%arg0: i32, %arg1: i32) -> (i32, i32, i32) {
    %c0_i32 = arith.constant 0 : i32
    %c0_i32_0 = arith.constant 0 : i32
    return %arg0, %c0_i32, %arg1 : i32, i32, i32
  }
  func.func @transform_1(%arg0: i32, %arg1: i32) -> (i32, i32, i32, i32) {
    %c0_i32 = arith.constant 0 : i32
    %c0_i32_0 = arith.constant 0 : i32
    %c0_i32_1 = arith.constant 0 : i32
    return %arg0, %arg1, %c0_i32, %c0_i32_0 : i32, i32, i32, i32
  }
}

</mosaic_0001>

<bundles_post_ra>
// kernel: tpu_custom_call.1
= control target key start
LH: loop header
LB: loop body
LE: loop exit
PB: predicated region body
PF: predicated region fallthrough
CT: control target
= control target key end

     0   :  { %6 = vsyncpa [#allocation3], 0  ;;  %s647_s0 = inlined_call_operand.hbm [shape: f32[2,8,128], index: 0, kind: input, shape index: {}]   ;;  %s648_s1 = inlined_call_operand.hbm [shape: f32[2,1,8,128], index: 1, kind: output, shape index: {}]  }
   0x1   :  { %8 = vsyncpa [#allocation3 + $0x1], 0 }
   0x2   :  { %9 = vsyncpa [#allocation4], 0 }
   0x3   :  { %11 = vsyncpa [#allocation4 + $0x1], 0  ;;  %s475_s6 = smov 0   ;;  %s477_s7 = smov 0  }
   0x4   :  { %s479_s8 = smov 0   ;;  %s481_s9 = smov 0  }
   0x5   :  { %s483_s10 = smov 0   ;;  %s485_s11 = smov 0  }
   0x6 LB: > { %s270_s12 = sadd.s32 4294967295, %s461_s11   ;;  %s271_s13 = sadd.s32 4294967294, %s461_s11   ;;  %s461_s11 = sphi %s485_s11, %s17_s11   ;;  %s457_s10 = sphi %s483_s10, %s664_s10   ;;  %s453_s9 = sphi %s481_s9, %s663_s9   ;;  %s449_s8 = sphi %s479_s8, %s662_s8   ;;  %s445_s7 = sphi %s477_s7, %s661_s7   ;;  %s441_s6 = sphi %s475_s6, %s660_s6  }
   0x7   : > { %s29_s14 = sadd.s32 1, %s457_s10  ;;  %s38_s15 = sadd.s32 1, %s449_s8 }
   0x8   : > { %p31_p0 = scmp.ge.s32.totalorder %s29_s14, 2  ;;  %p45_p1 = scmp.ne.s32.totalorder %s449_s8, %s445_s7 }
   0x9   : > { %p46_p2 = scmp.eq.s32.totalorder %s461_s11, 0  ;;  %p51_p3 = scmp.ne.s32.totalorder %s445_s7, %s441_s6 }
   0xa   : > { %s666_s14 = smov (%p31_p0, %s29_s14), 0  ;;  %p52_p5 = scmp.eq.s32.totalorder %s270_s12, 0 }
   0xb   : > { %p516_p4 = por %p46_p2, %p45_p1  ;;  %s33_s17 = ssub.s32 %s457_s10, %s666_s14 }
   0xc   : > { %p77_p6 = scmp.eq.s32.totalorder %s270_s12, 1  ;;  %p36_p7 = scmp.eq.s32.totalorder %s33_s17, 0 }
   0xd   : > { %p522_p8 = por %p52_p5, %p51_p3  ;;  %p83_p10 = scmp.eq.s32.totalorder %s271_s13, 1 }
   0xe   : > { %p526_p9 = por %p77_p6, %p45_p1  ;;  %p297_p13 = scmp.lt.s32.totalorder %s461_s11, 2 }
   0xf   : > { %s531_s20 = scalar_select %p36_p7, %s449_s8, %s38_s15  }
  0x10   : > { %s652_s19 = scalar_select %p526_p9, 1, 0 }
  0x11   : > { %p533_p11 = por %p83_p10, %p51_p3  ;;  %s103_s22 = sand.u32 1, %s449_s8  }
  0x12   : > { %s274_s23 = sshll.u32 %s103_s22, 3  ;;  %s275_s24 = sshll.u32 %s457_s10, 7 }
  0x13   : > { %s653_s21 = scalar_select %p533_p11, 1, 0 }
  0x14   : > { %s544_s27 = scalar_lea.hbm %s647_s0, %s275_s24  ;;  %s107_s28 = scalar_lea.vmem [#allocation2], %s274_s23 }
  0x15   : > { %s115_s29 = sshll.u32 %s107_s28, 4  ;;  %p550_p0 = pnand %p297_p13, %p516_p4  ;;  %s546_s29 = int_to_ptr.vmem [resolvable:$true] %s115_s29 }
  0x16   : > { %s104_s2 = scalar_lea.sflag [#allocation3], %s103_s22  ;;  %s349_s3 = scalar_lea.hbm %s544_s27, 128 }
  0x17   : > { %p350_p3 = scmp.ne.s32.totalorder %s544_s27, %s349_s3  ;;  %p351_p5 = pneg %p550_p0 }
  0x18   : > { %s354_s12 = scalar_lea.hbm %s647_s0, 256  ;;  %p355_p4 = scmp.lt.u32.totalorder %s544_s27, %s647_s0 }
  0x19   : > { %p352_p6 = pnand %p351_p5, %p350_p3  ;;  %p356_p10 = scmp.lt.u32.totalorder %s354_s12, %s349_s3 }
  0x1a   : > { %p358_p12 = scmp.lt.u32.totalorder %s349_s3, %s544_s27 }
  0x1b   : > { %p353_p7 = pneg %p352_p6  ;;  %p357_p13 = por %p356_p10, %p355_p4 }
  0x1d   : > { %p359_p1 = por %p358_p12, %p357_p13 }
  0x1f   : > { %p360_p2 = pnand %p359_p1, %p353_p7 }
  0x21   : > { %363 = shalt.err (!%p360_p2)
}
  0x22   : > { %s364_s16 = scalar_lea.vmem %s546_s29, 128  ;;  %s463_s17 = smov [#allocation2]  }
  0x23   : > { %p365_p3 = scmp.ne.s32.totalorder %s546_s29, %s364_s16  ;;  %s369_s22 = sshll.u32 %s463_s17, 4  ;;  %s370_s22 = int_to_ptr.vmem [resolvable:$false] %s369_s22 }
  0x24   : > { %s371_s23 = scalar_lea.vmem %s370_s22, 256  ;;  %p372_p9 = scmp.lt.s32.totalorder %s546_s29, %s370_s22 }
  0x25   : > { %p367_p6 = pnand %p365_p3, %p351_p5  ;;  %p373_p4 = scmp.lt.s32.totalorder %s371_s23, %s364_s16 }
  0x27   : > { %p368_p11 = pneg %p367_p6  ;;  %p374_p10 = por %p373_p4, %p372_p9 }
  0x29   : > { %p375_p12 = pnand %p374_p10, %p368_p11 }
  0x2b   : > { %378 = shalt.err (!%p375_p12)
}
  0x2c   : > { %292 = dma.hbm_to_vmem [thread:$0]  (!%p550_p0), %s544_s27, 128, %s546_s29, %s104_s2  }
  0x2d   : > { %p655_p1 = scmp.lt.s32.totalorder %s461_s11, 3  ;;  %p656_p2 = scmp.ge.s32.totalorder %s461_s11, 1 }
  0x2f   : > { %p121_p5 = pnand %p656_p2, %p655_p1 }
  0x30   : > { %s586_s24 = sand.u32 (!%p121_p5), 1, %s445_s7  }
  0x31   : > { %124 = sbr.rel (%p121_p5) target bundleno = 309 (0x135), region = 24  ;;  %s277_s25 = sshll.u32 (!%p121_p5), %s586_s24, 3 }
  0x32   : > { %s127_s26 = scalar_lea.sflag (!%p121_p5), [#allocation3], %s586_s24  ;;  %s130_s28 = scalar_lea.vmem (!%p121_p5), [#allocation2], %s277_s25 }
  0x38   : > { %432 = dma.done.wait (%p522_p8), %s127_s26, 128  }
  0x39   : > { %434 = vsyncadd (%p522_p8), %s127_s26, 4294967168  ;;  %v149_v0 = vld [vmem:[%s130_s28] sm:$0xff]  ;;  %vm160_vm0 = vcmask 1040384   ;;  %s148_s18 = scalar_lea.vmem [#allocation5], %s277_s25  ;;  %s280_s29 = sshll.u32 %s453_s9, 7 }
  0x3a   : > { %v150_v1 = vadd.f32 1e-16, %v149_v0  ;;  %s190_s27 = sshll.u32 %s148_s18, 4  ;;  %s598_s5 = scalar_lea.hbm %s648_s1, %s280_s29  ;;  %s600_s27 = int_to_ptr.vmem [resolvable:$true] %s190_s27 }
  0x3b   : > { %s176_s12 = scalar_lea.sflag [#allocation4], %s586_s24  ;;  %s379_s13 = scalar_lea.vmem %s600_s27, 128 }
  0x3c   : > { %347 = vlog2.f32 %v150_v1  ;;  %p380_p8 = scmp.ne.s32.totalorder %s600_s27, %s379_s13  ;;  %p657_p9 = scmp.ne.s32.totalorder %s652_s19, 0 }
  0x3d   : > { %s464_s9 = smov [#allocation5]  }
  0x3e   : > { %p381_p11 = pnand %p380_p8, %p657_p9  ;;  %s383_s15 = sshll.u32 %s464_s9, 4  ;;  %s384_s15 = int_to_ptr.vmem [resolvable:$false] %s383_s15 }
  0x3f   : > { %s385_s16 = scalar_lea.vmem %s384_s15, 256  ;;  %p386_p7 = scmp.lt.s32.totalorder %s600_s27, %s384_s15 }
  0x40   : > { %p382_p0 = pneg %p381_p11  ;;  %p387_p13 = scmp.lt.s32.totalorder %s385_s16, %s379_s13 }
  0x42   : > { %p388_p3 = por %p387_p13, %p386_p7 }
  0x44   : > { %p389_p6 = pnand %p388_p3, %p382_p0 }
  0x46   : > { %v348_v2 = vpop.eup %347 }
  0x47   : > { %v152_v3 = vmul.f32 0.6931472, %v348_v2 }
  0x49   : > { %v153_v4 = vmul.f32 %v152_v3, %v149_v0 }
  0x4b   : > { %v154_v5 = vrot.slane %v153_v4, 4 }
  0x4d   : > { %v155_v6 = vadd.f32 %v154_v5, %v153_v4 }
  0x4f   : > { %v156_v7 = vrot.slane %v155_v6, 2 }
  0x51   : > { %v157_v8 = vadd.f32 %v156_v7, %v155_v6 }
  0x53   : > { %v158_v9 = vrot.slane %v157_v8, 1 }
  0x55   : > { %v159_v10 = vadd.f32 %v158_v9, %v157_v8 }
  0x57   : > { %v161_v11 = vsel %vm160_vm0, %v159_v10, 0.0 }
  0x58   : > { %162 = vadd.xlane.f32.xlu0 %v161_v11 }
  0xe5   : > { %v163_v12 = vpop.xlane.xlu0 %162 }
  0xe6   : > { %v164_v13 = vrot.slane %v163_v12, 4 }
  0xe8   : > { %v165_v14 = vadd.f32 %v164_v13, %v163_v12 }
  0xea   : > { %v166_v15 = vrot.slane %v165_v14, 2 }
  0xec   : > { %v167_v16 = vadd.f32 %v166_v15, %v165_v14 }
  0xee   : > { %v168_v17 = vrot.slane %v167_v16, 1 }
  0xf0   : > { %v169_v18 = vadd.f32 %v168_v17, %v167_v16 }
  0xf2   : > { %283 = vpush %v169_v18 }
 0x123   : > { %s284_s30 = spop %283 }
 0x124   : > { %s171_s2 = ssub.f32 0.0, %s284_s30 }
 0x126   : > { %v172_v19 = vstv %s171_s2 }
 0x127   : > { %174 = vst [vmem:[%s148_s18] sm:$0xff] %v172_v19 }
 0x128   : > { %392 = shalt.err (!%p389_p6)
}
 0x129   : > { %s393_s17 = scalar_lea.hbm %s598_s5, 128  ;;  %s397_s24 = scalar_lea.hbm %s648_s1, 256 }
 0x12a   : > { %p394_p4 = scmp.ne.s32.totalorder %s598_s5, %s393_s17  ;;  %p398_p1 = scmp.lt.u32.totalorder %s598_s5, %s648_s1 }
 0x12b   : > { %p399_p2 = scmp.lt.u32.totalorder %s397_s24, %s393_s17  ;;  %p401_p8 = scmp.lt.u32.totalorder %s393_s17, %s598_s5 }
 0x12c   : > { %p395_p10 = pnand %p394_p4, %p657_p9 }
 0x12d   : > { %p400_p5 = por %p399_p2, %p398_p1 }
 0x12e   : > { %p396_p12 = pneg %p395_p10 }
 0x12f   : > { %p402_p11 = por %p401_p8, %p400_p5 }
 0x131   : > { %p403_p0 = pnand %p402_p11, %p396_p12 }
 0x133   : > { %406 = shalt.err (!%p403_p0)
}
 0x134   : > { %287 = dma.vmem_to_hbm [thread:$0]  (%p657_p9), %s600_s27, 128, %s598_s5, %s176_s12  }
 0x135 PF: > { %s202_s28 = sand.u32 1, %s441_s6   ;;  %p658_p7 = scmp.ne.s32.totalorder %s653_s21, 0 }
 0x136   : > { %p659_p13 = scmp.ge.s32.totalorder %s461_s11, 2  ;;  %s203_s18 = scalar_lea.sflag [#allocation4], %s202_s28 }
 0x138   : > { %p294_p3 = pnand %p659_p13, %p658_p7 }
 0x13a   : > { %436 = dma.done.wait (!%p294_p3), %s203_s18, 128  }
 0x13b   : > { %438 = vsyncadd (!%p294_p3), %s203_s18, 4294967168  ;;  %s17_s11 = sadd.s32 1, %s461_s11   ;;  %s660_s6 = smov %s445_s7 }
 0x13c   : > { %p14_p6 = scmp.ge.s32.totalorder %s17_s11, 4   ;;  %s661_s7 = smov %s449_s8 }
 0x13d   : > { %s662_s8 = smov %s531_s20  ;;  %s663_s9 = smov %s457_s10 }
 0x13e   : > { %s664_s10 = smov %s666_s14  ;;  %16 = sbr.rel (!%p14_p6) target bundleno = 6 (0x6), region = 69 }
 0x145   :  { %208 = vsyncpa [#allocation3], 1 }
 0x146   :  { %210 = vsyncpa [#allocation3 + $0x1], 1 }
 0x147   :  { %211 = vsyncpa [#allocation4], 1 }
 0x148   :  { %213 = vsyncpa [#allocation4 + $0x1], 1 }

</bundles_post_ra>
